<compile_context>
chip_gen: v7x
topology: tpu7x:2x2x1
jax: 0.10.0
libtpu: 0.0.40
codegen_flags: <defaults>
</compile_context>

<pallas_src>
import functools

import jax
import jax.numpy as jnp
from jax.experimental import pallas as pl
from jax.experimental.pallas import tpu as pltpu


def _round_up(x, m):
    return ((x + m - 1) // m) * m


def _largest_divisor(n, step, cap):
    """Largest multiple-of-`step` divisor of n that is <= cap (n % step == 0)."""
    t = min(cap, n)
    t -= t % step
    while t > step and n % t != 0:
        t -= step
    return max(t, step)


# Conservative VMEM budget for the weight-resident path.  v7x has 64 MiB
# physical / 32 MiB default scoped; v5e default scoped is 16 MiB, so we raise
# the scoped limit explicitly to 28 MiB (still far under every chip's physical
# VMEM) and keep the resident working set <= 20 MiB.
_RESIDENT_VMEM_BUDGET = 20 * 1024 * 1024
_RESIDENT_VMEM_LIMIT = 28 * 1024 * 1024


def _mm_resident_kernel(x_ref, w_ref, o_ref):
    # Whole (padded) weight matrix is VMEM-resident; one MXU pass per M tile.
    o_ref[...] = jnp.dot(
        x_ref[...], w_ref[...], preferred_element_type=jnp.float32
    ).astype(o_ref.dtype)


def _mm_tiled_kernel(x_ref, w_ref, o_ref):
    # Output block index is constant along the K axis -> o_ref stays resident,
    # so accumulate directly into it (no scratch accumulator needed).
    @pl.when(pl.program_id(2) == 0)
    def _():
        o_ref[...] = jnp.zeros_like(o_ref)

    o_ref[...] += jnp.dot(
        x_ref[...], w_ref[...], preferred_element_type=jnp.float32
    )


def _neat_matmul_padded(xp, wp, *, force_tiled=False):
    """Matmul of pre-padded operands.

    xp: (Bp, Kp) with Bp % 8 == 0, Kp % 128 == 0.
    wp: (Kp, Np) with Np % 128 == 0.
    Returns (Bp, Np) float32.
    """
    Bp, Kp = xp.shape
    Kpw, Np = wp.shape
    assert Kp == Kpw
    ib = jnp.dtype(xp.dtype).itemsize

    # ---- Weight-resident fast path (covers all NEAT-sized problems) --------
    tm = _largest_divisor(Bp, 8, 512)
    resident_bytes = (
        2 * tm * Kp * ib      # double-buffered x block
        + 2 * Kp * Np * ib    # W (constant index; budget 2x to be safe)
        + 2 * tm * Np * 4     # double-buffered f32 output block
    )
    if resident_bytes <= _RESIDENT_VMEM_BUDGET and not force_tiled:
        grid = (Bp // tm,)
        return pl.pallas_call(
            _mm_resident_kernel,
            out_shape=jax.ShapeDtypeStruct((Bp, Np), jnp.float32),
            grid=grid,
            in_specs=[
                pl.BlockSpec((tm, Kp), lambda i: (i, 0)),
                pl.BlockSpec((Kp, Np), lambda i: (0, 0)),   # W: DMA'd once
            ],
            out_specs=pl.BlockSpec((tm, Np), lambda i: (i, 0)),
            compiler_params=pltpu.CompilerParams(
                dimension_semantics=("parallel",),
                vmem_limit_bytes=_RESIDENT_VMEM_LIMIT,
            ),
            cost_estimate=pl.CostEstimate(
                flops=2 * Bp * Kp * Np,
                transcendentals=0,
                bytes_accessed=Bp * Kp * ib + Kp * Np * ib + Bp * Np * 4,
            ),
        )(xp, wp)

    # ---- Fallback: classic (M, N, K) tiled matmul ---------------------------
    tm = _largest_divisor(Bp, 8, 256)
    tn = _largest_divisor(Np, 128, 512)
    tk = _largest_divisor(Kp, 128, 1024)
    grid = (Bp // tm, Np // tn, Kp // tk)
    return pl.pallas_call(
        _mm_tiled_kernel,
        out_shape=jax.ShapeDtypeStruct((Bp, Np), jnp.float32),
        grid=grid,
        in_specs=[
            pl.BlockSpec((tm, tk), lambda i, j, k: (i, k)),
            pl.BlockSpec((tk, tn), lambda i, j, k: (k, j)),
        ],
        out_specs=pl.BlockSpec((tm, tn), lambda i, j, k: (i, j)),
        compiler_params=pltpu.CompilerParams(
            dimension_semantics=("parallel", "parallel", "arbitrary"),
        ),
        cost_estimate=pl.CostEstimate(
            flops=2 * Bp * Kp * Np,
            transcendentals=0,
            # Actual reuse: x is read Np/tn times, w is read Bp/tm times.
            bytes_accessed=(
                Bp * Kp * ib * (Np // tn)
                + Kp * Np * ib * (Bp // tm)
                + Bp * Np * 4
            ),
        ),
    )(xp, wp)


@functools.partial(jax.jit, static_argnames=("compute_dtype",))
def neat_forward(x, w, compute_dtype=jnp.float32):
    """x: (B, input_dim), w: (input_dim, output_dim) -> (B, output_dim) f32.

    Pads only to (8, 128) alignment, runs the Pallas matmul, slices back.
    """
    B, K = x.shape
    Kw, N = w.shape
    if K != Kw:
        raise ValueError("Input dim is not correct")
    Bp, Kp, Np = _round_up(B, 8), _round_up(K, 128), _round_up(N, 128)

    xp = x.astype(compute_dtype)
    wp = w.astype(compute_dtype)
    if (Bp, Kp) != (B, K):
        xp = jnp.pad(xp, ((0, Bp - B), (0, Kp - K)))
    if (Kp, Np) != (K, N):
        wp = jnp.pad(wp, ((0, Kp - K), (0, Np - N)))

    out = _neat_matmul_padded(xp, wp)
    return out[:B, :N]


@functools.partial(jax.jit, static_argnames=("out_dim", "compute_dtype"))
def _forward_with_padded_w(x, wp, out_dim, compute_dtype):
    """Steady-state forward: W is already padded/cast at construction."""
    B, K = x.shape
    Bp, Kp = _round_up(B, 8), wp.shape[0]
    xp = x.astype(compute_dtype)
    if (Bp, Kp) != (B, K):
        xp = jnp.pad(xp, ((0, Bp - B), (0, Kp - K)))
    out = _neat_matmul_padded(xp, wp)
    return out[:B, :out_dim]


class NeatNN:
    """Minimal JAX mirror of NN(input_dim, output_dim) right after __init__."""

    def __init__(self, input_dim, output_dim, key, compute_dtype=jnp.float32):
        self.input_dim = input_dim
        self.output_dim = output_dim
        self.compute_dtype = compute_dtype
        # One scalar weight per (input node i -> output node o) connection,
        # matching torch.randn(1) per ConnectionGene, laid out as (D_in, D_out).
        self.weights = jax.random.normal(
            key, (input_dim, output_dim), dtype=jnp.float32
        )
        # Pad (and optionally cast) W once here, not on every forward call.
        Kp = _round_up(input_dim, 128)
        Np = _round_up(output_dim, 128)
        self.weights_padded = jnp.pad(
            self.weights, ((0, Kp - input_dim), (0, Np - output_dim))
        ).astype(compute_dtype)

    def forward(self, x):
        x = x.reshape(x.shape[0], -1)  # x.view(B, -1)
        if x.shape[1] != self.input_dim:
            raise ValueError("Input dim is not correct")
        return _forward_with_padded_w(
            x.astype(jnp.float32),
            self.weights_padded,
            self.output_dim,
            self.compute_dtype,
        )


# TODO(synk): NEAT mutation-added hidden nodes (topological traversal with
# sigmoid on non-output nodes) are not represented; a fresh NN has none, so the
# forward pass is exactly the single matmul implemented here.


if __name__ == "__main__":
    key = jax.random.PRNGKey(0)
    k_x, k_w, k_x2, k_w2, k_x3, k_w3 = jax.random.split(key, 6)

    # --- small fresh-NN shapes implied by the module: x.view(B, -1) flattens
    # to input_dim.  Single-block weight-resident path, exact f32 parity. ---
    input_dim, output_dim, batch = 16, 8, 2
    x = jax.random.normal(k_x, (batch, 1, 4, 4), dtype=jnp.float32)

    model = NeatNN(input_dim, output_dim, k_w)
    logits = jax.block_until_ready(model.forward(x))

    ref = jnp.dot(
        x.reshape(batch, -1), model.weights, precision=jax.lax.Precision.HIGHEST
    )
    assert logits.shape == (batch, output_dim)
    assert jnp.allclose(logits, ref, atol=1e-4, rtol=1e-4)

    # --- larger batch / stacked-population shape: still weight-resident
    # (W ~ 1 MiB), multi-row M tile, no tile-rounding padding of B or K. ---
    B2, K2, N2 = 160, 640, 384
    x2 = jax.random.normal(k_x2, (B2, K2), dtype=jnp.float32)
    w2 = jax.random.normal(k_w2, (K2, N2), dtype=jnp.float32)
    ref2 = jnp.dot(x2, w2, precision=jax.lax.Precision.HIGHEST)

    out2 = jax.block_until_ready(neat_forward(x2, w2))
    assert out2.shape == (B2, N2)
    assert jnp.allclose(out2, ref2, atol=1e-2, rtol=1e-2)

    # bf16 compute path (recommended on v5e/v6e/v7x for throughput); f32
    # accumulation, looser tolerance vs the f32 reference.
    out2_bf16 = jax.block_until_ready(
        neat_forward(x2, w2, compute_dtype=jnp.bfloat16)
    )
    assert jnp.allclose(out2_bf16, ref2, atol=1.0, rtol=5e-2)

    # --- exercise the tiled (M, N, K) fallback kernel (forced; only used when
    # W exceeds the VMEM-resident budget). ---
    B3, K3, N3 = 16, 2048, 256
    x3 = jax.random.normal(k_x3, (B3, K3), dtype=jnp.float32)
    w3 = jax.random.normal(k_w3, (K3, N3), dtype=jnp.float32)
    out3 = jax.block_until_ready(_neat_matmul_padded(x3, w3, force_tiled=True))
    ref3 = jnp.dot(x3, w3, precision=jax.lax.Precision.HIGHEST)
    assert jnp.allclose(out3, ref3, atol=1e-2, rtol=1e-2)

    print("KERNEL_OK")
</pallas_src>

<mosaic_0001>
module attributes {stable_mosaic.version = 11 : i64} {
  func.func @_mm_resident_kernel(%arg0: i32, %arg1: memref<8x128xf32, #tpu.memory_space<vmem>>, %arg2: memref<128x128xf32, #tpu.memory_space<vmem>>, %arg3: memref<8x128xf32, #tpu.memory_space<vmem>>) attributes {dimension_semantics = [#tpu.dimension_semantics<parallel>], iteration_bounds = array<i64: 1>, scalar_prefetch = 0 : i64, scratch_operands = 0 : i64, tpu.core_type = #tpu.core_type<tc>, window_params = [{transform_indices = @transform_0, window_bounds = array<i64: 8, 128>}, {pipeline_mode = #tpu.pipeline_mode<synchronous>, transform_indices = @transform_1, window_bounds = array<i64: 128, 128>}, {transform_indices = @transform_2, window_bounds = array<i64: 8, 128>}]} {
    %c0 = arith.constant 0 : index
    %c0_0 = arith.constant 0 : index
    %0 = vector.load %arg1[%c0, %c0_0] : memref<8x128xf32, #tpu.memory_space<vmem>>, vector<8x128xf32>
    %c0_1 = arith.constant 0 : index
    %c0_2 = arith.constant 0 : index
    %1 = vector.load %arg2[%c0_1, %c0_2] : memref<128x128xf32, #tpu.memory_space<vmem>>, vector<128x128xf32>
    %cst = arith.constant dense<0.000000e+00> : vector<8x128xf32>
    %2 = tpu.matmul %0, %1, %cst {dimension_numbers = #tpu.dot_dimension_numbers<[1], [0], [0], [1], [0, 0, 1, 1], [], []>} : vector<8x128xf32>, vector<128x128xf32>, vector<8x128xf32> -> vector<8x128xf32>
    %c0_3 = arith.constant 0 : index
    %c0_4 = arith.constant 0 : index
    %3 = vector.load %arg3[%c0_3, %c0_4] : memref<8x128xf32, #tpu.memory_space<vmem>>, vector<8x128xf32>
    tpu.vector_store %arg3[%c0_3, %c0_4], %2 {strides = array<i32>} : memref<8x128xf32, #tpu.memory_space<vmem>>, vector<8x128xf32>,
    return
  }
  func.func @transform_0(%arg0: i32) -> (i32, i32) {
    %c0_i32 = arith.constant 0 : i32
    %c0_i32_0 = arith.constant 0 : i32
    return %arg0, %c0_i32 : i32, i32
  }
  func.func @transform_1(%arg0: i32) -> (i32, i32) {
    %c0_i32 = arith.constant 0 : i32
    %c0_i32_0 = arith.constant 0 : i32
    %c0_i32_1 = arith.constant 0 : i32
    return %c0_i32, %c0_i32_0 : i32, i32
  }
  func.func @transform_2(%arg0: i32) -> (i32, i32) {
    %c0_i32 = arith.constant 0 : i32
    %c0_i32_0 = arith.constant 0 : i32
    return %arg0, %c0_i32 : i32, i32
  }
}

</mosaic_0001>

<bundles_post_ra>
// kernel: _forward_with_padded_w.1
= control target key start
LH: loop header
LB: loop body
LE: loop exit
PB: predicated region body
PF: predicated region fallthrough
CT: control target
= control target key end

     0   :  { %7 = vsyncpa [#allocation3], 0  ;;  %s224_s9 = smov [#allocation2]   ;;  %s263_s0 = inlined_call_operand.vmem [shape: f32[8,128], index: 0, kind: input, shape index: {}]   ;;  %s264_s1 = inlined_call_operand.hbm [shape: f32[128,128], index: 1, kind: input, shape index: {}]   ;;  %s265_s2 = inlined_call_operand.vmem [shape: f32[8,128], index: 2, kind: output, shape index: {}]  }
   0x1   :  { %s15_s10 = sshll.u32 %s224_s9, 4  ;;  %s200_s13 = scalar_lea.hbm %s264_s1, 2048  ;;  %s16_s10 = int_to_ptr.vmem [resolvable:$true] %s15_s10 }
   0x2   :  { %p201_p0 = scmp.ne.s32.totalorder %s264_s1, %s200_s13  ;;  %p204_p1 = scmp.lt.u32.totalorder %s200_s13, %s264_s1 }
   0x4   :  { %p206_p2 = pnand %p204_p1, %p201_p0 }
   0x6   :  { %209 = shalt.err (!%p206_p2)
}
   0x7   :  { %s210_s18 = scalar_lea.vmem %s16_s10, 2048  ;;  %p215_p4 = scmp.lt.s32.totalorder %s16_s10, %s16_s10 }
   0x8   :  { %p211_p3 = scmp.ne.s32.totalorder %s16_s10, %s210_s18  ;;  %p216_p5 = scmp.lt.s32.totalorder %s210_s18, %s210_s18 }
   0xa   :  { %p217_p6 = por %p216_p5, %p215_p4 }
   0xc   :  { %p218_p7 = pnand %p217_p6, %p211_p3 }
   0xe   :  { %221 = shalt.err (!%p218_p7)
}
   0xf   :  { %s225_s19 = smov 128   ;;  %s226_s20 = smov 8  }
  0x10   :  { %21 = dma.hbm_to_vmem [thread:$0]  %s264_s1, 2048, %s16_s10, [#allocation3], %s225_s19, %s225_s19, %s226_s20  }
  0x11   :  { %222 = dma.done.wait [#allocation3], 2048  }
  0x12   :  { %223 = vsyncadd [#allocation3], 4294965248  ;;  %v227_v0 = vmov 0.0|0.0   ;;  %vm228_vm0 = vmmov 0   ;;  %v229_v1 = vmov 0.0   ;;  %v26_v2 = vld [vmem:[#allocation2] sm:$0xff] }
  0x13   :  { %170 = vmatprep.subr.bf16.mxu0 %v227_v0  ;;  %167 = vmatprep.mubr.msk.f32.mxu0 %vm228_vm0, %v229_v1  ;;  %v27_v3 = vld [vmem:[#allocation2 + $0x8] sm:$0xff]  ;;  %v28_v4 = vld [vmem:[#allocation2 + $0x10] sm:$0xff]  ;;  %v29_v6 = vld [vmem:[#allocation2 + $0x18] sm:$0xff] }
  0x14   :  { %v171_v5 = vpack.c.bf16 %v27_v3, %v26_v2  ;;  %v174_v7 = vpack.c.bf16 %v29_v6, %v28_v4  ;;  %v30_v8 = vld [vmem:[#allocation2 + $0x20] sm:$0xff]  ;;  %v31_v9 = vld [vmem:[#allocation2 + $0x28] sm:$0xff]  ;;  %v32_v11 = vld [vmem:[#allocation2 + $0x30] sm:$0xff] }
  0x15   :  { %v177_v10 = vpack.c.bf16 %v31_v9, %v30_v8  ;;  %v33_v12 = vld [vmem:[#allocation2 + $0x38] sm:$0xff]  ;;  %v34_v14 = vld [vmem:[#allocation2 + $0x40] sm:$0xff]  ;;  %v35_v15 = vld [vmem:[#allocation2 + $0x48] sm:$0xff] }
  0x16   :  { %172 = vmatpush3.bf16.msra.mxu0 %v171_v5  ;;  %v180_v13 = vpack.c.bf16 %v33_v12, %v32_v11  ;;  %v183_v16 = vpack.c.bf16 %v35_v15, %v34_v14  ;;  %v36_v17 = vld [vmem:[#allocation2 + $0x50] sm:$0xff]  ;;  %v37_v18 = vld [vmem:[#allocation2 + $0x58] sm:$0xff]  ;;  %v38_v20 = vld [vmem:[#allocation2 + $0x60] sm:$0xff] }
  0x17   :  { %173 = vmatprep.subr.bf16.mxu0 %v227_v0  ;;  %v186_v19 = vpack.c.bf16 %v37_v18, %v36_v17  ;;  %v39_v21 = vld [vmem:[#allocation2 + $0x68] sm:$0xff]  ;;  %v40_v23 = vld [vmem:[#allocation2 + $0x70] sm:$0xff]  ;;  %v41_v24 = vld [vmem:[#allocation2 + $0x78] sm:$0xff] }
  0x18   :  { %v189_v22 = vpack.c.bf16 %v39_v21, %v38_v20  ;;  %v192_v25 = vpack.c.bf16 %v41_v24, %v40_v23  ;;  %v25_v26 = vld [vmem:[%s263_s0] sm:$0xff] }
  0x1a   :  { %175 = vmatpush3.bf16.msra.mxu0 %v174_v7 }
  0x1b   :  { %176 = vmatprep.subr.bf16.mxu0 %v227_v0 }
  0x1e   :  { %178 = vmatpush3.bf16.msra.mxu0 %v177_v10 }
  0x1f   :  { %179 = vmatprep.subr.bf16.mxu0 %v227_v0 }
  0x22   :  { %181 = vmatpush3.bf16.msra.mxu0 %v180_v13 }
  0x23   :  { %182 = vmatprep.subr.bf16.mxu0 %v227_v0 }
  0x26   :  { %184 = vmatpush3.bf16.msra.mxu0 %v183_v16 }
  0x27   :  { %185 = vmatprep.subr.bf16.mxu0 %v227_v0 }
  0x2a   :  { %187 = vmatpush3.bf16.msra.mxu0 %v186_v19 }
  0x2b   :  { %188 = vmatprep.subr.bf16.mxu0 %v227_v0 }
  0x2e   :  { %190 = vmatpush3.bf16.msra.mxu0 %v189_v22 }
  0x2f   :  { %191 = vmatprep.subr.bf16.mxu0 %v227_v0 }
  0x32   :  { %193 = vmatpush3.bf16.msra.mxu0 %v192_v25 }
  0x35   :  { %168 = vmatmul.mubr.f32.vlgmr.msra.gmra.mrb[0].mxu0 %v25_v26 }
 0x108   :  { %v108_v27 = vpop.f32.mrb[0].mxu0 }
 0x109   :  { %112 = vst [vmem:[%s265_s2] sm:$0xff] %v108_v27  ;;  %v169_v28 = vpop.f32.mrb[1].mxu0 }
 0x10a   :  { %117 = vsyncpa [#allocation3], 1 }

</bundles_post_ra>
